<compile_context>
chip_gen: v6e
topology: v6e:2x2x1
jax: 0.10.0
libtpu: 0.0.40
codegen_flags: <defaults>
</compile_context>

<pallas_src>
import functools

import jax
import jax.numpy as jnp
import numpy as np
from jax.experimental import pallas as pl
from jax.experimental.pallas import tpu as pltpu

EPS = 1e-5


def _round_up(x, m):
    return ((x + m - 1) // m) * m


def _nbytes(shape, dt):
    return int(np.prod(shape)) * jnp.dtype(dt).itemsize


@functools.lru_cache(maxsize=None)
def _tpu_kind():
    try:
        return jax.devices()[0].device_kind.lower()
    except Exception:
        return ""


@functools.lru_cache(maxsize=None)
def _vmem_cap_bytes():
    """Per-generation scoped-VMEM cap with headroom for compiler scratch."""
    cap = None
    try:
        cap = int(pltpu.get_tpu_info().vmem_capacity_bytes)
    except Exception:
        cap = None
    if cap is None:
        cap = (64 << 20) if "v7" in _tpu_kind() else (128 << 20)
    if cap <= (64 << 20):
        # v7x: never hand the compiler the whole 64 MiB.
        return cap - (12 << 20)
    # v5e / v6e: 128 MiB physical -> allow up to ~112 MiB scoped.
    return min(cap - (16 << 20), 112 << 20)


@functools.lru_cache(maxsize=None)
def _default_tile_sizes():
    """(tile_n, tile_v) defaults per TPU generation (see perf review)."""
    kind = _tpu_kind()
    if "v7" in kind:
        return 1024, 1024   # 64 MiB VMEM/TC: keep the footprint well under ~48 MiB
    if "v6" in kind:
        return 2048, 1024   # 128 MiB VMEM: big token tile = fewer embedding re-streams
    if "v5" in kind:
        return 1024, 1024   # ~240 flop/B crossover; larger tn mostly costs VMEM
    return 1024, 1024


# ----------------------------------------------------------------------------
# Kernel
# ----------------------------------------------------------------------------
def lm_head_kernel(x_ref, wd_ref, bd_ref, g_ref, we_ref, bdec_ref, out_ref, h_scratch):
    # grid = (token tiles i, vocab tiles j); j is the innermost (sequential) axis.
    j = pl.program_id(1)

    # dense -> SiLU -> RMSNorm does not depend on the vocab tile: compute once per
    # token tile and keep it resident in VMEM scratch across the vocab sweep.
    # NOTE: relies on the vocab axis being sequential ("arbitrary") — do not flip
    # the grid order or mark j "parallel".
    @pl.when(j == 0)
    def _():
        # dense: x (tn, H_in) contracted with W (H_out, H_in) on H_in -> (tn, H_out)
        h = jax.lax.dot_general(
            x_ref[...], wd_ref[...],
            dimension_numbers=(((1,), (1,)), ((), ())),
            preferred_element_type=jnp.float32)
        h = h + bd_ref[...]                                  # bias in f32
        h = h * jax.nn.sigmoid(h)                            # SiLU
        var = jnp.mean(h * h, axis=-1, keepdims=True)        # RMSNorm stats in f32
        h = h * jax.lax.rsqrt(var + EPS)
        h_scratch[...] = (h * g_ref[...]).astype(h_scratch.dtype)

    # decoder: h (tn, H) contracted with tied-embedding tile (tv, H) on H -> (tn, tv)
    # TODO(synk): check the Mosaic bundle for per-tile vxpose from this contraction;
    # if present, pre-transpose the embedding to (H, Vp) once in prepare().
    logits = jax.lax.dot_general(
        h_scratch[...], we_ref[...],
        dimension_numbers=(((1,), (1,)), ((), ())),
        preferred_element_type=jnp.float32)
    out_ref[...] = (logits + bdec_ref[...]).astype(out_ref.dtype)


# ----------------------------------------------------------------------------
# One-time parameter preparation (cache the result across forward calls!)
# ----------------------------------------------------------------------------
def prepare_lm_head_params(w_dense, b_dense, rms_gamma, emb_weight, b_decoder,
                           *, tile_v=None, weight_dtype=None):
    """Pad the vocab dim to a tile multiple and cast weights to the streaming dtype.

    Doing this per forward call costs 1-2 extra full HBM passes over the (V,H)
    embedding — comparable to the kernel runtime — so call once and cache.
    """
    V, H = emb_weight.shape
    assert w_dense.shape == (H, H)

    if tile_v is None:
        tile_v = _default_tile_sizes()[1]
    tv = _round_up(min(int(tile_v), _round_up(V, 128)), 128)
    Vp = _round_up(V, tv)

    wdt = jnp.dtype(weight_dtype) if weight_dtype is not None else jnp.dtype(w_dense.dtype)
    # TODO(synk): opt-in fp8 (e4m3, per-row scaled) embedding stream on v7x and
    # int8 on v5e/v6e (accuracy-gated) — further halves the dominant HBM stream.

    if Vp != V:
        emb_weight = jnp.pad(emb_weight, ((0, Vp - V), (0, 0)))
        b_decoder = jnp.pad(b_decoder, (0, Vp - V))

    params = dict(
        wd=w_dense.astype(wdt),                              # (H_out, H_in), native layout
        bd=b_dense.reshape(1, H).astype(jnp.float32),
        g=rms_gamma.reshape(1, H).astype(jnp.float32),
        we=emb_weight.astype(wdt),                           # (Vp, H), native layout
        bdec=b_decoder.reshape(1, Vp).astype(jnp.float32),
    )
    meta = dict(V=int(V), H=int(H), Vp=int(Vp), tv=int(tv), wdt=wdt)
    return params, meta


# ----------------------------------------------------------------------------
# Per-call jitted apply (only x is padded / cast here)
# ----------------------------------------------------------------------------
@functools.partial(jax.jit, static_argnames=("tile_n", "tv", "vocab_size", "out_dtype"))
def apply_lm_head(x, wd, bd, g, we, bdec, *, tile_n, tv, vocab_size, out_dtype):
    N, H = x.shape
    Vp = we.shape[0]
    wdt = jnp.dtype(wd.dtype)
    odt = jnp.dtype(out_dtype)

    tn = _round_up(min(int(tile_n), _round_up(N, 8)), 8)
    Np = _round_up(N, tn)

    # Cast x to the streaming dtype in the wrapper (halves the x DMA + its VMEM
    # footprint for bf16); numerics identical — the kernel fed the MXU in wdt anyway.
    x = x.astype(wdt)
    if Np != N:
        x = jnp.pad(x, ((0, Np - N), (0, 0)))

    scratch_dtype = jnp.bfloat16 if wdt == jnp.bfloat16 else jnp.float32

    # VMEM budget: single-buffered invariant blocks + double-buffered streamed blocks.
    est = (_nbytes((tn, H), wdt)                     # x tile           (Buffered(1))
           + _nbytes((H, H), wdt)                    # dense weight     (Buffered(1))
           + 2 * _nbytes((1, H), jnp.float32)        # bias + gamma     (Buffered(1))
           + 2 * _nbytes((tv, H), wdt)               # embedding tile   (double-buffered)
           + 2 * _nbytes((1, tv), jnp.float32)       # decoder bias     (double-buffered)
           + 2 * _nbytes((tn, tv), odt)              # output tile      (double-buffered)
           + _nbytes((tn, H), scratch_dtype))        # h scratch
    vmem_limit = int(min(max(est * 5 // 4 + (4 << 20), 16 << 20), _vmem_cap_bytes()))

    # Advisory cost estimate so XLA schedules surrounding ops around this kernel.
    cost = pl.CostEstimate(
        flops=2 * Np * H * H + 2 * Np * H * Vp,
        transcendentals=Np * H,                       # sigmoid in SiLU
        bytes_accessed=(_nbytes((Np, H), wdt) + _nbytes((H, H), wdt)
                        + (Np // tn) * _nbytes((Vp, H), wdt)
                        + _nbytes((1, Vp), jnp.float32) + 2 * _nbytes((1, H), jnp.float32)
                        + _nbytes((Np, Vp), odt)))

    grid = (Np // tn, Vp // tv)

    # TODO(synk): for H >= ~2-4k, tile the dense (H,H) matmul over K with a nested
    # pltpu.emit_pipeline instead of loading the full weight block.
    # TODO(synk): if xprof shows the j==0 transform bubble exposed at large tn,
    # split dense+SiLU+RMSNorm into its own pallas_call writing h (N,H) bf16 to HBM.
    out = pl.pallas_call(
        lm_head_kernel,
        out_shape=jax.ShapeDtypeStruct((Np, Vp), odt),
        grid_spec=pltpu.PrefetchScalarGridSpec(
            num_scalar_prefetch=0,
            grid=grid,
            in_specs=[
                # Blocks invariant over the vocab axis: single-buffer to free VMEM.
                pl.BlockSpec((tn, H), lambda i, j: (i, 0), pipeline_mode=pl.Buffered(1)),
                pl.BlockSpec((H, H), lambda i, j: (0, 0), pipeline_mode=pl.Buffered(1)),
                pl.BlockSpec((1, H), lambda i, j: (0, 0), pipeline_mode=pl.Buffered(1)),
                pl.BlockSpec((1, H), lambda i, j: (0, 0), pipeline_mode=pl.Buffered(1)),
                # Streamed vocab tiles: keep default double-buffering.
                pl.BlockSpec((tv, H), lambda i, j: (j, 0)),
                pl.BlockSpec((1, tv), lambda i, j: (0, j)),
            ],
            out_specs=pl.BlockSpec((tn, tv), lambda i, j: (i, j)),
            scratch_shapes=[pltpu.VMEM((tn, H), scratch_dtype)],
        ),
        compiler_params=pltpu.CompilerParams(
            # token tiles independent -> megacore; scratch carried across vocab tiles
            dimension_semantics=("parallel", "arbitrary"),
            vmem_limit_bytes=vmem_limit,
        ),
        cost_estimate=cost,
    )(x, wd, bd, g, we, bdec)

    if Np != N or Vp != vocab_size:
        out = out[:N, :vocab_size]
    return out


# ----------------------------------------------------------------------------
# Convenience wrapper (prepares params per call — cache prepare() in production)
# ----------------------------------------------------------------------------
def bert_lm_prediction_head(x, w_dense, b_dense, rms_gamma, emb_weight, b_decoder,
                            *, tile_n=None, tile_v=None, weight_dtype=None, out_dtype=None):
    """
    x          : (N, H)   hidden states (N = batch*seq tokens)
    w_dense    : (H, H)   PyTorch nn.Linear weight, (out, in) layout
    b_dense    : (H,)
    rms_gamma  : (H,)
    emb_weight : (V, H)   tied embedding weights (decoder.weight), native layout
    b_decoder  : (V,)
    returns    : (N, V)   logits
    """
    params, meta = prepare_lm_head_params(
        w_dense, b_dense, rms_gamma, emb_weight, b_decoder,
        tile_v=tile_v, weight_dtype=weight_dtype)
    if tile_n is None:
        tile_n = _default_tile_sizes()[0]
    if out_dtype is None:
        # Production (bf16-weight) path defaults to bf16 logits: halves the (N,V)
        # writeback and the output double-buffer.  Accumulation stays f32.
        out_dtype = jnp.bfloat16 if meta["wdt"] == jnp.bfloat16 else x.dtype
    return apply_lm_head(
        x, params["wd"], params["bd"], params["g"], params["we"], params["bdec"],
        tile_n=int(tile_n), tv=meta["tv"], vocab_size=meta["V"],
        out_dtype=jnp.dtype(out_dtype))


def reference(x, w_dense, b_dense, rms_gamma, emb_weight, b_decoder):
    h = x @ w_dense.T + b_dense
    h = h * jax.nn.sigmoid(h)
    var = jnp.mean(h * h, axis=-1, keepdims=True)
    h = h * jax.lax.rsqrt(var + EPS) * rms_gamma
    return h @ emb_weight.T + b_decoder


if __name__ == "__main__":
    # Small deterministic shapes; N and V deliberately NOT tile multiples to
    # exercise the padding path (real BERT vocabs like 30522 aren't either).
    batch, seq, H, V = 2, 7, 128, 250
    N = batch * seq

    key = jax.random.PRNGKey(0)
    k1, k2, k3, k4, k5 = jax.random.split(key, 5)

    x = jax.random.normal(k1, (N, H), dtype=jnp.float32)
    w_dense = jax.random.normal(k2, (H, H), dtype=jnp.float32) * 0.02
    b_dense = jax.random.normal(k3, (H,), dtype=jnp.float32) * 0.02
    rms_gamma = jnp.ones((H,), dtype=jnp.float32)            # RMSNorm init = ones
    emb_weight = jax.random.normal(k4, (V, H), dtype=jnp.float32) * 0.02
    b_decoder = jax.random.normal(k5, (V,), dtype=jnp.float32) * 0.02

    ref = reference(x, w_dense, b_dense, rms_gamma, emb_weight, b_decoder)

    # 1) full-precision path (convenience wrapper): strict check.
    out_f32 = bert_lm_prediction_head(
        x, w_dense, b_dense, rms_gamma, emb_weight, b_decoder, out_dtype=jnp.float32)
    out_f32 = jax.block_until_ready(out_f32)
    assert out_f32.shape == (N, V)
    np.testing.assert_allclose(np.asarray(out_f32), np.asarray(ref), rtol=2e-5, atol=2e-5)

    # 2) production bf16 path: prepare once (padded / pre-cast weights cached),
    #    then the per-call jitted apply only pads/casts x.  Loose check.
    params, meta = prepare_lm_head_params(
        w_dense, b_dense, rms_gamma, emb_weight, b_decoder, weight_dtype=jnp.bfloat16)
    out_bf16 = apply_lm_head(
        x, params["wd"], params["bd"], params["g"], params["we"], params["bdec"],
        tile_n=_default_tile_sizes()[0], tv=meta["tv"], vocab_size=meta["V"],
        out_dtype=jnp.dtype(jnp.bfloat16))
    out_bf16 = jax.block_until_ready(out_bf16)
    assert out_bf16.shape == (N, V)
    np.testing.assert_allclose(np.asarray(out_bf16.astype(jnp.float32)), np.asarray(ref),
                               rtol=5e-2, atol=5e-2)

    print("KERNEL_OK")
</pallas_src>

<mosaic_0001>
module attributes {stable_mosaic.version = 11 : i64} {
  func.func @lm_head_kernel(%arg0: i32, %arg1: i32, %arg2: memref<16x128xf32, #tpu.memory_space<vmem>>, %arg3: memref<128x128xf32, #tpu.memory_space<vmem>>, %arg4: memref<1x128xf32, #tpu.memory_space<vmem>>, %arg5: memref<1x128xf32, #tpu.memory_space<vmem>>, %arg6: memref<256x128xf32, #tpu.memory_space<vmem>>, %arg7: memref<1x256xf32, #tpu.memory_space<vmem>>, %arg8: memref<16x256xf32, #tpu.memory_space<vmem>>, %arg9: memref<16x128xf32, #tpu.memory_space<vmem>>) attributes {dimension_semantics = [#tpu.dimension_semantics<parallel>, #tpu.dimension_semantics<arbitrary>], iteration_bounds = array<i64: 1, 1>, scalar_prefetch = 0 : i64, scratch_operands = 1 : i64, tpu.core_type = #tpu.core_type<tc>, window_params = [{pipeline_mode = #tpu.pipeline_mode<synchronous>, transform_indices = @transform_0, window_bounds = array<i64: 16, 128>}, {pipeline_mode = #tpu.pipeline_mode<synchronous>, transform_indices = @transform_1, window_bounds = array<i64: 128, 128>}, {pipeline_mode = #tpu.pipeline_mode<synchronous>, transform_indices = @transform_2, window_bounds = array<i64: 1, 128>}, {pipeline_mode = #tpu.pipeline_mode<synchronous>, transform_indices = @transform_3, window_bounds = array<i64: 1, 128>}, {transform_indices = @transform_4, window_bounds = array<i64: 256, 128>}, {transform_indices = @transform_5, window_bounds = array<i64: 1, 256>}, {transform_indices = @transform_6, window_bounds = array<i64: 16, 256>}]} {
    %c0_i32 = arith.constant 0 : i32
    %0 = arith.cmpi eq, %arg1, %c0_i32 : i32
    %1 = arith.extui %0 : i1 to i32
    %c0_i32_0 = arith.constant 0 : i32
    %2 = arith.cmpi ne, %1, %c0_i32_0 : i32
    scf.if %2 {
      %c0_8 = arith.constant 0 : index
      %c0_9 = arith.constant 0 : index
      %10 = vector.load %arg2[%c0_8, %c0_9] : memref<16x128xf32, #tpu.memory_space<vmem>>, vector<16x128xf32>
      %c0_10 = arith.constant 0 : index
      %c0_11 = arith.constant 0 : index
      %11 = vector.load %arg3[%c0_10, %c0_11] : memref<128x128xf32, #tpu.memory_space<vmem>>, vector<128x128xf32>
      %cst_12 = arith.constant dense<0.000000e+00> : vector<16x128xf32>
      %12 = tpu.matmul %10, %11, %cst_12 {dimension_numbers = #tpu.dot_dimension_numbers<[1], [1], [0], [0], [0, 0, 1, 0], [], []>} : vector<16x128xf32>, vector<128x128xf32>, vector<16x128xf32> -> vector<16x128xf32>
      %c0_13 = arith.constant 0 : index
      %c0_14 = arith.constant 0 : index
      %13 = vector.load %arg4[%c0_13, %c0_14] : memref<1x128xf32, #tpu.memory_space<vmem>>, vector<1x128xf32>
      %14 = vector.broadcast %13 : vector<1x128xf32> to vector<16x128xf32>
      %15 = arith.addf %12, %14 : vector<16x128xf32>
      %16 = arith.negf %15 : vector<16x128xf32>
      %17 = math.exp %16 : vector<16x128xf32>
      %cst_15 = arith.constant 1.000000e+00 : f32
      %18 = vector.broadcast %cst_15 : f32 to vector<16x128xf32>
      %19 = arith.addf %18, %17 : vector<16x128xf32>
      %20 = arith.divf %18, %19 : vector<16x128xf32>
      %21 = arith.mulf %15, %20 : vector<16x128xf32>
      %22 = arith.mulf %21, %21 : vector<16x128xf32>
      %cst_16 = arith.constant dense<0.000000e+00> : vector<16xf32>
      %23 = vector.multi_reduction <add>, %22, %cst_16 [1] : vector<16x128xf32> to vector<16xf32>
      %24 = vector.shape_cast %23 : vector<16xf32> to vector<16x1xf32>
      %cst_17 = arith.constant 1.280000e+02 : f32
      %25 = vector.broadcast %cst_17 : f32 to vector<16x1xf32>
      %26 = arith.divf %24, %25 : vector<16x1xf32>
      %cst_18 = arith.constant 9.99999974E-6 : f32
      %27 = vector.broadcast %cst_18 : f32 to vector<16x1xf32>
      %28 = arith.addf %26, %27 : vector<16x1xf32>
      %29 = math.rsqrt %28 : vector<16x1xf32>
      %30 = vector.broadcast %29 : vector<16x1xf32> to vector<16x128xf32>
      %31 = arith.mulf %21, %30 : vector<16x128xf32>
      %c0_19 = arith.constant 0 : index
      %c0_20 = arith.constant 0 : index
      %32 = vector.load %arg5[%c0_19, %c0_20] : memref<1x128xf32, #tpu.memory_space<vmem>>, vector<1x128xf32>
      %33 = vector.broadcast %32 : vector<1x128xf32> to vector<16x128xf32>
      %34 = arith.mulf %31, %33 : vector<16x128xf32>
      %c0_21 = arith.constant 0 : index
      %c0_22 = arith.constant 0 : index
      %35 = vector.load %arg9[%c0_21, %c0_22] : memref<16x128xf32, #tpu.memory_space<vmem>>, vector<16x128xf32>
      tpu.vector_store %arg9[%c0_21, %c0_22], %34 {strides = array<i32>} : memref<16x128xf32, #tpu.memory_space<vmem>>, vector<16x128xf32>,
    } else {
    }
    %c0 = arith.constant 0 : index
    %c0_1 = arith.constant 0 : index
    %3 = vector.load %arg9[%c0, %c0_1] : memref<16x128xf32, #tpu.memory_space<vmem>>, vector<16x128xf32>
    %c0_2 = arith.constant 0 : index
    %c0_3 = arith.constant 0 : index
    %4 = vector.load %arg6[%c0_2, %c0_3] : memref<256x128xf32, #tpu.memory_space<vmem>>, vector<256x128xf32>
    %cst = arith.constant dense<0.000000e+00> : vector<16x256xf32>
    %5 = tpu.matmul %3, %4, %cst {dimension_numbers = #tpu.dot_dimension_numbers<[1], [1], [0], [0], [0, 0, 1, 0], [], []>} : vector<16x128xf32>, vector<256x128xf32>, vector<16x256xf32> -> vector<16x256xf32>
    %c0_4 = arith.constant 0 : index
    %c0_5 = arith.constant 0 : index
    %6 = vector.load %arg7[%c0_4, %c0_5] : memref<1x256xf32, #tpu.memory_space<vmem>>, vector<1x256xf32>
    %7 = vector.broadcast %6 : vector<1x256xf32> to vector<16x256xf32>
    %8 = arith.addf %5, %7 : vector<16x256xf32>
    %c0_6 = arith.constant 0 : index
    %c0_7 = arith.constant 0 : index
    %9 = vector.load %arg8[%c0_6, %c0_7] : memref<16x256xf32, #tpu.memory_space<vmem>>, vector<16x256xf32>
    tpu.vector_store %arg8[%c0_6, %c0_7], %8 {strides = array<i32>} : memref<16x256xf32, #tpu.memory_space<vmem>>, vector<16x256xf32>,
    return
  }
  func.func @transform_0(%arg0: i32, %arg1: i32) -> (i32, i32) {
    %c0_i32 = arith.constant 0 : i32
    %c0_i32_0 = arith.constant 0 : i32
    return %arg0, %c0_i32 : i32, i32
  }
  func.func @transform_1(%arg0: i32, %arg1: i32) -> (i32, i32) {
    %c0_i32 = arith.constant 0 : i32
    %c0_i32_0 = arith.constant 0 : i32
    %c0_i32_1 = arith.constant 0 : i32
    return %c0_i32, %c0_i32_0 : i32, i32
  }
  func.func @transform_2(%arg0: i32, %arg1: i32) -> (i32, i32) {
    %c0_i32 = arith.constant 0 : i32
    %c0_i32_0 = arith.constant 0 : i32
    %c0_i32_1 = arith.constant 0 : i32
    return %c0_i32, %c0_i32_0 : i32, i32
  }
  func.func @transform_3(%arg0: i32, %arg1: i32) -> (i32, i32) {
    %c0_i32 = arith.constant 0 : i32
    %c0_i32_0 = arith.constant 0 : i32
    %c0_i32_1 = arith.constant 0 : i32
    return %c0_i32, %c0_i32_0 : i32, i32
  }
  func.func @transform_4(%arg0: i32, %arg1: i32) -> (i32, i32) {
    %c0_i32 = arith.constant 0 : i32
    %c0_i32_0 = arith.constant 0 : i32
    return %arg1, %c0_i32 : i32, i32
  }
  func.func @transform_5(%arg0: i32, %arg1: i32) -> (i32, i32) {
    %c0_i32 = arith.constant 0 : i32
    %c0_i32_0 = arith.constant 0 : i32
    return %c0_i32, %arg1 : i32, i32
  }
  func.func @transform_6(%arg0: i32, %arg1: i32) -> (i32, i32) {
    %c0_i32 = arith.constant 0 : i32
    return %arg0, %arg1 : i32, i32
  }
}

</mosaic_0001>

<bundles_post_ra>
// kernel: apply_lm_head.1
= control target key start
LH: loop header
LB: loop body
LE: loop exit
PB: predicated region body
PF: predicated region fallthrough
CT: control target
= control target key end

     0   :  { %11 = vsyncpa [#allocation4], 0  ;;  %s585_s0 = inlined_call_operand.vmem [shape: f32[16,128], index: 0, kind: input, shape index: {}]   ;;  %s586_s1 = inlined_call_operand.hbm [shape: f32[128,128], index: 1, kind: input, shape index: {}]   ;;  %s587_s2 = inlined_call_operand.vmem [shape: f32[1,128], index: 2, kind: input, shape index: {}]   ;;  %s588_s3 = inlined_call_operand.vmem [shape: f32[1,128], index: 3, kind: input, shape index: {}]   ;;  %s589_s4 = inlined_call_operand.hbm [shape: f32[256,128], index: 4, kind: input, shape index: {}]   ;;  %s590_s5 = inlined_call_operand.vmem [shape: f32[1,256], index: 5, kind: input, shape index: {}]   ;;  %s591_s6 = inlined_call_operand.hbm [shape: f32[16,256], index: 6, kind: output, shape index: {}]  }
   0x1   :  { %12 = vsyncpa [#allocation7], 0 }
   0x2   :  { %13 = vsyncpa [#allocation5], 0  ;;  %s519_s21 = smov [#allocation3]  }
   0x3   :  { %s21_s22 = sshll.u32 %s519_s21, 4  ;;  %s22_s22 = int_to_ptr.vmem [resolvable:$true] %s21_s22 }
   0x4   :  { %s461_s23 = scalar_lea.vmem %s22_s22, 2048  ;;  %p466_p1 = scmp.lt.s32.totalorder %s22_s22, %s22_s22 }
   0x5   :  { %p462_p0 = scmp.ne.s32.totalorder %s22_s22, %s461_s23  ;;  %p467_p2 = scmp.lt.s32.totalorder %s461_s23, %s461_s23 }
   0x7   :  { %p468_p3 = por %p467_p2, %p466_p1 }
   0x9   :  { %p469_p4 = pnand %p468_p3, %p462_p0 }
   0xb   :  { %472 = shalt.err (!%p469_p4)
}
   0xc   :  { %s520_s24 = smov 128   ;;  %s521_s25 = smov 8  }
   0xd   :  { %27 = dma.hbm_to_vmem [thread:$0]  %s586_s1, 2048, %s22_s22, [#allocation4], %s520_s24, %s520_s24, %s521_s25  }
   0xe   :  { %s522_s28 = smov [#allocation6]  }
   0xf   :  { %s37_s29 = sshll.u32 %s522_s28, 4  ;;  %s38_s29 = int_to_ptr.vmem [resolvable:$true] %s37_s29 }
  0x10   :  { %s481_s30 = scalar_lea.vmem %s38_s29, 4096  ;;  %p486_p6 = scmp.lt.s32.totalorder %s38_s29, %s38_s29 }
  0x11   :  { %p482_p5 = scmp.ne.s32.totalorder %s38_s29, %s481_s30  ;;  %p487_p7 = scmp.lt.s32.totalorder %s481_s30, %s481_s30 }
  0x13   :  { %p488_p8 = por %p487_p7, %p486_p6 }
  0x15   :  { %p489_p9 = pnand %p488_p8, %p482_p5 }
  0x17   :  { %492 = shalt.err (!%p489_p9)
}
  0x18   :  { %43 = dma.hbm_to_vmem [thread:$0]  %s589_s4, 4096, %s38_s29, [#allocation7], %s520_s24, %s520_s24, %s521_s25  }
  0x19   :  { %513 = dma.done.wait [#allocation4], 2048  }
  0x1a   :  { %514 = vsyncadd [#allocation4], 4294965248 }
  0x1b   :  { %515 = dma.done.wait [#allocation7], 4096  }
  0x1c   :  { %516 = vsyncadd [#allocation7], 4294963200  ;;  %v73_v0 = vld [vmem:[#allocation3 + $0x78] sm:$0xff]  ;;  %v72_v1 = vld [vmem:[#allocation3 + $0x70] sm:$0xff] }
  0x1d   :  { %399 = vmatprep.subr.mxu0 %v73_v0  ;;  %v71_v2 = vld [vmem:[#allocation3 + $0x68] sm:$0xff]  ;;  %v56_v3 = vld [vmem:[%s585_s0] sm:$0xff]  ;;  %v69_v5 = vld [vmem:[#allocation3 + $0x58] sm:$0xff] }
  0x1e   :  { %400 = vmatpush3.xpose.msra.mxu0 %v73_v0  ;;  %431 = vmatprep.mubr.f32.mxu0 %v56_v3  ;;  %v70_v4 = vld [vmem:[#allocation3 + $0x60] sm:$0xff]  ;;  %v68_v6 = vld [vmem:[#allocation3 + $0x50] sm:$0xff]  ;;  %v67_v7 = vld [vmem:[#allocation3 + $0x48] sm:$0xff] }
  0x1f   :  { %401 = vmatprep.subr.mxu0 %v72_v1  ;;  %v66_v8 = vld [vmem:[#allocation3 + $0x40] sm:$0xff]  ;;  %v65_v9 = vld [vmem:[#allocation3 + $0x38] sm:$0xff]  ;;  %v64_v10 = vld [vmem:[#allocation3 + $0x30] sm:$0xff] }
  0x20   :  { %v63_v11 = vld [vmem:[#allocation3 + $0x28] sm:$0xff]  ;;  %v62_v12 = vld [vmem:[#allocation3 + $0x20] sm:$0xff]  ;;  %v61_v13 = vld [vmem:[#allocation3 + $0x18] sm:$0xff] }
  0x21   :  { %v60_v14 = vld [vmem:[#allocation3 + $0x10] sm:$0xff]  ;;  %v59_v15 = vld [vmem:[#allocation3 + $0x8] sm:$0xff]  ;;  %v58_v16 = vld [vmem:[#allocation3] sm:$0xff] }
  0x22   :  { %402 = vmatpush3.xpose.msra.mxu0 %v72_v1  ;;  %v57_v17 = vld [vmem:[%s585_s0 + $0x8] sm:$0xff]  ;;  %v229_v18 = vld [vmem:[#allocation6 + $0xf8] sm:$0xff]  ;;  %v228_v20 = vld [vmem:[#allocation6 + $0xf0] sm:$0xff] }
  0x23   :  { %403 = vmatprep.subr.mxu0 %v71_v2  ;;  %v213_v19 = vld [vmem:[#allocation6 + $0x78] sm:$0xff]  ;;  %363 = vmatprep.subr.mxu1 %v229_v18  ;;  %v212_v21 = vld [vmem:[#allocation6 + $0x70] sm:$0xff]  ;;  %v227_v22 = vld [vmem:[#allocation6 + $0xe8] sm:$0xff] }
  0x24   :  { %364 = vmatpush3.xpose.msra.mxu1 %v213_v19  ;;  %v211_v23 = vld [vmem:[#allocation6 + $0x68] sm:$0xff]  ;;  %v226_v24 = vld [vmem:[#allocation6 + $0xe0] sm:$0xff]  ;;  %v225_v26 = vld [vmem:[#allocation6 + $0xd8] sm:$0xff] }
  0x25   :  { %365 = vmatprep.subr.mxu1 %v228_v20  ;;  %v210_v25 = vld [vmem:[#allocation6 + $0x60] sm:$0xff]  ;;  %v209_v27 = vld [vmem:[#allocation6 + $0x58] sm:$0xff]  ;;  %v224_v28 = vld [vmem:[#allocation6 + $0xd0] sm:$0xff] }
  0x26   :  { %404 = vmatpush3.xpose.msra.mxu0 %v71_v2  ;;  %v208_v29 = vld [vmem:[#allocation6 + $0x50] sm:$0xff]  ;;  %v223_v30 = vld [vmem:[#allocation6 + $0xc8] sm:$0xff]  ;;  %v222_v32 = vld [vmem:[#allocation6 + $0xc0] sm:$0xff] }
  0x27   :  { %405 = vmatprep.subr.mxu0 %v70_v4  ;;  %v207_v31 = vld [vmem:[#allocation6 + $0x48] sm:$0xff]  ;;  %v206_v33 = vld [vmem:[#allocation6 + $0x40] sm:$0xff]  ;;  %v221_v34 = vld [vmem:[#allocation6 + $0xb8] sm:$0xff] }
  0x28   :  { %366 = vmatpush3.xpose.msra.mxu1 %v212_v21  ;;  %v205_v35 = vld [vmem:[#allocation6 + $0x38] sm:$0xff]  ;;  %v220_v36 = vld [vmem:[#allocation6 + $0xb0] sm:$0xff]  ;;  %v219_v38 = vld [vmem:[#allocation6 + $0xa8] sm:$0xff] }
  0x29   :  { %367 = vmatprep.subr.mxu1 %v227_v22  ;;  %v204_v37 = vld [vmem:[#allocation6 + $0x30] sm:$0xff]  ;;  %v341_v39 = vld [vmem:[%s587_s2] ss:$0 sm:$0xff]  ;;  %v203_v56 = vld [vmem:[#allocation6 + $0x28] sm:$0xff] }
  0x2a   :  { %406 = vmatpush3.xpose.msra.mxu0 %v70_v4  ;;  %v218_v57 = vld [vmem:[#allocation6 + $0xa0] sm:$0xff]  ;;  %v217_v59 = vld [vmem:[#allocation6 + $0x98] sm:$0xff]  ;;  %v216_v61 = vld [vmem:[#allocation6 + $0x90] sm:$0xff] }
  0x2b   :  { %407 = vmatprep.subr.mxu0 %v69_v5  ;;  %v202_v58 = vld [vmem:[#allocation6 + $0x20] sm:$0xff]  ;;  %v201_v60 = vld [vmem:[#allocation6 + $0x18] sm:$0xff]  ;;  %v200_v62 = vld [vmem:[#allocation6 + $0x10] sm:$0xff] }
  0x2c   :  { %368 = vmatpush3.xpose.msra.mxu1 %v211_v23  ;;  %v215_v63 = vld [vmem:[#allocation6 + $0x88] sm:$0xff]  ;;  %v214_v1 = vld [vmem:[#allocation6 + $0x80] sm:$0xff] }
  0x2d   :  { %369 = vmatprep.subr.mxu1 %v226_v24  ;;  %v199_v0 = vld [vmem:[#allocation6 + $0x8] sm:$0xff]  ;;  %v198_v2 = vld [vmem:[#allocation6] sm:$0xff] }
  0x2e   :  { %408 = vmatpush3.xpose.msra.mxu0 %v69_v5  ;;  %v230_v19 = vld [vmem:[%s590_s5] sm:$0x3] }
  0x2f   :  { %409 = vmatprep.subr.mxu0 %v68_v6 }
  0x30   :  { %370 = vmatpush3.xpose.msra.mxu1 %v210_v25 }
  0x31   :  { %371 = vmatprep.subr.mxu1 %v225_v26 }
  0x32   :  { %410 = vmatpush3.xpose.msra.mxu0 %v68_v6 }
  0x33   :  { %411 = vmatprep.subr.mxu0 %v67_v7 }
  0x34   :  { %372 = vmatpush3.xpose.msra.mxu1 %v209_v27 }
  0x35   :  { %373 = vmatprep.subr.mxu1 %v224_v28 }
  0x36   :  { %412 = vmatpush3.xpose.msra.mxu0 %v67_v7 }
  0x37   :  { %413 = vmatprep.subr.mxu0 %v66_v8 }
  0x38   :  { %374 = vmatpush3.xpose.msra.mxu1 %v208_v29 }
  0x39   :  { %375 = vmatprep.subr.mxu1 %v223_v30 }
  0x3a   :  { %414 = vmatpush3.xpose.msra.mxu0 %v66_v8 }
  0x3b   :  { %415 = vmatprep.subr.mxu0 %v65_v9 }
  0x3c   :  { %376 = vmatpush3.xpose.msra.mxu1 %v207_v31 }
  0x3d   :  { %377 = vmatprep.subr.mxu1 %v222_v32 }
  0x3e   :  { %416 = vmatpush3.xpose.msra.mxu0 %v65_v9 }
  0x3f   :  { %417 = vmatprep.subr.mxu0 %v64_v10 }
  0x40   :  { %378 = vmatpush3.xpose.msra.mxu1 %v206_v33 }
  0x41   :  { %379 = vmatprep.subr.mxu1 %v221_v34 }
  0x42   :  { %418 = vmatpush3.xpose.msra.mxu0 %v64_v10  ;;  %v344_v10 = vld [vmem:[%s588_s3] ss:$0 sm:$0xff]  ;;  %s523_s3 = smov [#allocation8]  }
  0x43   :  { %419 = vmatprep.subr.mxu0 %v63_v11  ;;  %s328_s15 = sshll.u32 %s523_s3, 4  ;;  %s329_s15 = int_to_ptr.vmem [resolvable:$true] %s328_s15 }
  0x44   :  { %380 = vmatpush3.xpose.msra.mxu1 %v205_v35  ;;  %s493_s16 = scalar_lea.vmem %s329_s15, 512  ;;  %p498_p11 = scmp.lt.s32.totalorder %s329_s15, %s329_s15 }
  0x45   :  { %381 = vmatprep.subr.mxu1 %v220_v36  ;;  %p494_p10 = scmp.ne.s32.totalorder %s329_s15, %s493_s16  ;;  %p499_p12 = scmp.lt.s32.totalorder %s493_s16, %s493_s16 }
  0x46   :  { %420 = vmatpush3.xpose.msra.mxu0 %v63_v11 }
  0x47   :  { %421 = vmatprep.subr.mxu0 %v62_v12  ;;  %p500_p13 = por %p499_p12, %p498_p11 }
  0x48   :  { %382 = vmatpush3.xpose.msra.mxu1 %v204_v37 }
  0x49   :  { %383 = vmatprep.subr.mxu1 %v219_v38  ;;  %p501_p0 = pnand %p500_p13, %p494_p10 }
  0x4a   :  { %422 = vmatpush3.xpose.msra.mxu0 %v62_v12 }
  0x4b   :  { %423 = vmatprep.subr.mxu0 %v61_v13 }
  0x4c   :  { %384 = vmatpush3.xpose.msra.mxu1 %v203_v56 }
  0x4d   :  { %385 = vmatprep.subr.mxu1 %v218_v57 }
  0x4e   :  { %424 = vmatpush3.xpose.msra.mxu0 %v61_v13 }
  0x4f   :  { %425 = vmatprep.subr.mxu0 %v60_v14 }
  0x50   :  { %386 = vmatpush3.xpose.msra.mxu1 %v202_v58 }
  0x51   :  { %387 = vmatprep.subr.mxu1 %v217_v59 }
  0x52   :  { %426 = vmatpush3.xpose.msra.mxu0 %v60_v14 }
  0x53   :  { %427 = vmatprep.subr.mxu0 %v59_v15 }
  0x54   :  { %388 = vmatpush3.xpose.msra.mxu1 %v201_v60 }
  0x55   :  { %389 = vmatprep.subr.mxu1 %v216_v61 }
  0x56   :  { %428 = vmatpush3.xpose.msra.mxu0 %v59_v15 }
  0x57   :  { %429 = vmatprep.subr.mxu0 %v58_v16 }
  0x58   :  { %390 = vmatpush3.xpose.msra.mxu1 %v200_v62 }
  0x59   :  { %391 = vmatprep.subr.mxu1 %v215_v63 }
  0x5a   :  { %430 = vmatpush3.xpose.msra.mxu0 %v58_v16  ;;  %v232_v16 = vlaneseq }
  0x5c   :  { %392 = vmatpush3.xpose.msra.mxu1 %v199_v0 }
  0x5d   :  { %432 = vmatmul.mubr.f32.vlgmr.msra.gmra.mxu0 %v57_v17  ;;  %393 = vmatprep.subr.mxu1 %v214_v1  ;;  %v233_v17 = vshrl.u32 %v232_v16, 7 }
  0x5f   :  { %v234_v18 = vsub.s32 0, %v233_v17  ;;  %v238_v20 = vsub.s32 1, %v233_v17 }
  0x60   :  { %394 = vmatpush3.xpose.msra.mxu1 %v198_v2 }
  0x61   :  { %v235_v21 = vrot.slane %v230_v19, %v234_v18  ;;  %v239_v22 = vrot.slane %v230_v19, %v238_v20 }
 0x11d   :  { %v433_v40 = vpop.f32.mrf.mxu0 }
 0x11e   :  { %v153_v41 = vadd.f32 %v433_v40, %v341_v39 }
 0x11f   :  { %v147_v42 = vpop.f32.mrf.mxu0 }
 0x120   :  { %v343_v43 = vmul.f32 -1.442695, %v153_v41  ;;  %v148_v44 = vadd.f32 %v341_v39, %v147_v42 }
 0x122   :  { %441 = vpow2.f32 %v343_v43  ;;  %v342_v45 = vmul.f32 -1.442695, %v148_v44 }
 0x124   :  { %443 = vpow2.f32 %v342_v45 }
 0x12f   :  { %v442_v46 = vpop.eup %441 }
 0x130   :  { %v163_v47 = vadd.f32 1.0, %v442_v46 }
 0x131   :  { %v444_v48 = vpop.eup %443 }
 0x132   :  { %v162_v49 = vadd.f32 1.0, %v444_v48  ;;  %445 = vrcp.f32 %v163_v47 }
 0x134   :  { %447 = vrcp.f32 %v162_v49 }
 0x13f   :  { %v446_v50 = vpop.eup %445 }
 0x140   :  { %v169_v53 = vmul.f32 %v446_v50, %v153_v41 }
 0x141   :  { %v448_v51 = vpop.eup %447 }
 0x142   :  { %v168_v52 = vmul.f32 %v448_v51, %v148_v44  ;;  %v171_v55 = vmul.f32 %v169_v53, %v169_v53 }
 0x144   :  { %v170_v54 = vmul.f32 %v168_v52, %v168_v52 }
 0x146   :  { %172 = vadd.xlane.f32.xlu0 %v170_v54 }
 0x14a   :  { %174 = vadd.xlane.f32.xlu0 %v171_v55 }
 0x1cf   :  { %v173_v3 = vpop.xlane.xlu0 %172 }
 0x1d0   :  { %v177_v4 = vmul.f32 0.0078125, %v173_v3 }
 0x1d2   :  { %v179_v5 = vadd.f32 1e-05, %v177_v4 }
 0x1d3   :  { %v175_v6 = vpop.xlane.xlu0 %174 }
 0x1d4   :  { %449 = vrsqrt.f32 %v179_v5  ;;  %v178_v7 = vmul.f32 0.0078125, %v175_v6 }
 0x1d6   :  { %v180_v8 = vadd.f32 1e-05, %v178_v7 }
 0x1d8   :  { %451 = vrsqrt.f32 %v180_v8 }
 0x1e1   :  { %v450_v9 = vpop.eup %449 }
 0x1e2   :  { %v183_v11 = vmul.f32 %v450_v9, %v168_v52 }
 0x1e4   :  { %v192_v12 = vmul.f32 %v344_v10, %v183_v11 }
 0x1e5   :  { %v452_v13 = vpop.eup %451 }
 0x1e6   :  { %v184_v14 = vmul.f32 %v452_v13, %v169_v53  ;;  %395 = vmatprep.mubr.f32.mxu1 %v192_v12 }
 0x1e7   :  { %396 = vmatmul.mubr.f32.vlgmr.msra.gmra.mxu1 %v192_v12 }
 0x1e8   :  { %v193_v15 = vmul.f32 %v344_v10, %v184_v14 }
 0x1ea   :  { %397 = vmatprep.mubr.f32.mxu1 %v193_v15 }
 0x1eb   :  { %398 = vmatmul.mubr.f32.gmra.mxu1 %v193_v15 }
 0x2a7   :  { %v308_v23 = vpop.f32.mrf.mxu1 }
 0x2a8   :  { %v309_v24 = vadd.f32 %v308_v23, %v235_v21 }
 0x2a9   :  { %v310_v25 = vpop.f32.mrf.mxu1 }
 0x2aa   :  { %319 = vst [vmem:[#allocation8] sm:$0xff] %v309_v24  ;;  %v311_v26 = vadd.f32 %v310_v25, %v239_v22 }
 0x2ab   :  { %v314_v27 = vpop.f32.mrf.mxu1 }
 0x2ac   :  { %320 = vst [vmem:[#allocation8 + $0x8] sm:$0xff] %v311_v26  ;;  %v315_v28 = vadd.f32 %v314_v27, %v235_v21 }
 0x2ad   :  { %v316_v29 = vpop.f32.mrf.mxu1 }
 0x2ae   :  { %321 = vst [vmem:[#allocation8 + $0x10] sm:$0xff] %v315_v28  ;;  %v317_v30 = vadd.f32 %v316_v29, %v239_v22 }
 0x2b0   :  { %322 = vst [vmem:[#allocation8 + $0x18] sm:$0xff] %v317_v30 }
 0x2b1   :  { %504 = shalt.err (!%p501_p0)
}
 0x2b2   :  { %s524_s5 = smov 256   ;;  %s525_s17 = smov 16  }
 0x2b3   :  { %334 = dma.vmem_to_hbm [thread:$0]  %s329_s15, 512, %s591_s6, [#allocation5], %s524_s5, %s524_s5, %s525_s17  }
 0x2b4   :  { %517 = dma.done.wait [#allocation5], 512  }
 0x2b5   :  { %518 = vsyncadd [#allocation5], 4294966784 }
 0x2b6   :  { %338 = vsyncpa [#allocation4], 1 }
 0x2b7   :  { %339 = vsyncpa [#allocation7], 1 }
 0x2b8   :  { %340 = vsyncpa [#allocation5], 1 }

</bundles_post_ra>
